<compile_context>
chip_gen: v7x
topology: tpu7x:2x2x1
jax: 0.10.0
libtpu: 0.0.40
codegen_flags: <defaults>
</compile_context>

<pallas_src>
import functools
import math

import jax
import jax.numpy as jnp
from jax.experimental import pallas as pl
from jax.experimental.pallas import tpu as pltpu

_INV_SQRT2 = 1.0 / math.sqrt(2.0)


def _gelu(h, approximate):
    if approximate:
        # torch GELU(approximate='tanh') — EUP path, cheaper when VALU-bound.
        return jax.nn.gelu(h, approximate=True)
    # Exact erf GELU (torch.nn.GELU() default).
    return 0.5 * h * (1.0 + jax.lax.erf(h * _INV_SQRT2))


def _ffn_kernel_resident(x_ref, w1_ref, b1_ref, w2_ref, b2_ref, o_ref, *,
                         approximate_gelu):
    # Weights are VMEM-resident (constant block index): single-shot FFN tile.
    h = jnp.dot(x_ref[...], w1_ref[...], preferred_element_type=jnp.float32)
    h = _gelu(h + b1_ref[...].astype(jnp.float32), approximate_gelu)
    # Dropout(p=0.0) is identity — nothing to do.
    out = jnp.dot(h.astype(w2_ref.dtype), w2_ref[...],
                  preferred_element_type=jnp.float32)
    o_ref[...] = (out + b2_ref[...].astype(jnp.float32)).astype(o_ref.dtype)


def _ffn_kernel_stream(x_ref, w1_ref, b1_ref, w2_ref, b2_ref, o_ref, acc_ref, *,
                       approximate_gelu):
    # Hidden dim streamed in chunks along grid axis 1; f32 VMEM accumulator.
    k = pl.program_id(1)

    @pl.when(k == 0)
    def _():
        acc_ref[...] = jnp.zeros_like(acc_ref)

    h = jnp.dot(x_ref[...], w1_ref[...], preferred_element_type=jnp.float32)
    h = _gelu(h + b1_ref[...].astype(jnp.float32), approximate_gelu)
    # Dropout(p=0.0) is identity.
    acc_ref[...] += jnp.dot(h.astype(w2_ref.dtype), w2_ref[...],
                            preferred_element_type=jnp.float32)

    @pl.when(k == pl.num_programs(1) - 1)
    def _():
        o_ref[...] = (acc_ref[...] + b2_ref[...].astype(jnp.float32)
                      ).astype(o_ref.dtype)


def _round_up(x, m):
    return (x + m - 1) // m * m


def _sublane_pack(itemsize):
    # Rows per packed sublane group: 8 (f32), 16 (bf16/f16), 32 (int8/fp8).
    return 8 * max(1, 4 // max(1, itemsize))


def _vmem_capacity_bytes():
    try:
        return int(pltpu.get_tpu_info().vmem_capacity_bytes)
    except Exception:
        return 64 << 20  # conservative fallback: v7x has 64 MiB / TensorCore


def _pick_row_tile(rows, itemsize, pack):
    # Streamed-weight arithmetic intensity scales with tm, so aim large; the
    # VMEM-budget pass shrinks it if needed.
    target = 1024 if itemsize <= 2 else 512
    if rows <= pack:
        return pack
    if rows < 2 * target:
        if rows >= 256:
            # >=2 row tiles so the 'parallel' axis can split across v7x
            # megacore TensorCores.
            return _round_up(-(-rows // 2), pack)
        return _round_up(rows, pack)
    return target


def _vmem_estimate(tm, tk, dim, hidden, x_bytes, w_bytes, out_bytes, resident):
    # Pallas double-buffers every BlockSpec'd operand.
    x_buf = 2 * tm * dim * x_bytes
    o_buf = 2 * tm * dim * out_bytes
    if resident:
        w_buf = 2 * (dim * hidden + hidden + hidden * dim + dim) * w_bytes
        acc = 0
    else:
        w_buf = 2 * (dim * tk + tk + tk * dim + dim) * w_bytes
        acc = tm * dim * 4
    return x_buf + o_buf + w_buf + acc


def _choose_tiles(rows, dim, hidden, x_bytes, w_bytes, out_bytes, budget,
                  row_tile, hidden_tile):
    pack = _sublane_pack(x_bytes)
    if row_tile is not None:
        tm = max(pack, _round_up(row_tile, pack))
    else:
        tm = _pick_row_tile(rows, x_bytes, pack)
    tm = min(tm, max(pack, _round_up(rows, pack)))

    def fits(tm_, tk_):
        return _vmem_estimate(tm_, tk_, dim, hidden, x_bytes, w_bytes,
                              out_bytes, tk_ == hidden) <= budget

    if hidden_tile is not None:
        tk = hidden_tile
        while tm > pack and not fits(tm, tk):
            tm = max(pack, _round_up(tm // 2, pack))
        return tm, tk

    # k-tile candidates: full hidden first (VMEM-resident weights), then >=256
    # chunks to keep the 256-wide MXU filled; 128 only as a last resort.
    tks = [hidden] + [c for c in (1024, 512, 384, 256, 128)
                      if c < hidden and hidden % c == 0]
    while True:
        for tk in tks:
            if fits(tm, tk):
                return tm, tk
        if tm <= pack:
            return tm, tks[-1]
        tm = max(pack, _round_up(tm // 2, pack))  # shrink tm only as last resort


def feedforward_pallas(x, w1, b1, w2, b2, *, row_tile=None, hidden_tile=None,
                       approximate_gelu=False):
    """x: (..., dim). Weights: w1 (dim, hidden), b1 (hidden,),
    w2 (hidden, dim), b2 (dim,)."""
    dim = x.shape[-1]
    hidden = w1.shape[1]
    orig_shape = x.shape

    x2d = x.reshape(-1, dim)
    rows = x2d.shape[0]

    # Zero-pad the hidden dim to a 128-lane multiple: padded columns give
    # h = GELU(0 + 0) = 0 and the matching zero rows of w2 contribute nothing.
    hidden_p = max(128, _round_up(hidden, 128))
    if hidden_p != hidden:
        w1 = jnp.pad(w1, ((0, 0), (0, hidden_p - hidden)))
        b1 = jnp.pad(b1, (0, hidden_p - hidden))
        w2 = jnp.pad(w2, ((0, hidden_p - hidden), (0, 0)))

    x_bytes = x.dtype.itemsize
    w_bytes = w1.dtype.itemsize
    out_bytes = x_bytes

    capacity = _vmem_capacity_bytes()
    budget = max(16 << 20, min(int(0.85 * capacity), capacity - (8 << 20)))

    tm, tk = _choose_tiles(rows, dim, hidden_p, x_bytes, w_bytes, out_bytes,
                           budget, row_tile, hidden_tile)
    assert hidden_p % tk == 0, "hidden must be divisible by the hidden tile"

    padded_rows = _round_up(rows, tm)
    if padded_rows != rows:
        x2d = jnp.pad(x2d, ((0, padded_rows - rows), (0, 0)))

    b1_2d = b1.reshape(1, hidden_p)
    b2_2d = b2.reshape(1, dim)

    n_row_tiles = padded_rows // tm
    n_k_tiles = hidden_p // tk
    resident = n_k_tiles == 1

    est = _vmem_estimate(tm, tk, dim, hidden_p, x_bytes, w_bytes, out_bytes,
                         resident)
    vmem_limit = int(min(capacity - (1 << 20),
                         max(int(est * 1.25) + (8 << 20), 32 << 20)))

    weight_bytes = (dim * hidden_p + hidden_p + hidden_p * dim + dim) * w_bytes
    cost = pl.CostEstimate(
        flops=4 * padded_rows * dim * hidden_p,
        transcendentals=padded_rows * hidden_p,
        bytes_accessed=(padded_rows * dim * (x_bytes + out_bytes)
                        + weight_bytes * (1 if resident else n_row_tiles)),
    )

    if resident:
        kernel = functools.partial(_ffn_kernel_resident,
                                   approximate_gelu=approximate_gelu)
        grid_spec = pltpu.PrefetchScalarGridSpec(
            num_scalar_prefetch=0,
            grid=(n_row_tiles,),
            in_specs=[
                pl.BlockSpec((tm, dim), lambda i: (i, 0)),        # x row tile
                pl.BlockSpec((dim, hidden_p), lambda i: (0, 0)),  # w1 resident
                pl.BlockSpec((1, hidden_p), lambda i: (0, 0)),    # b1 resident
                pl.BlockSpec((hidden_p, dim), lambda i: (0, 0)),  # w2 resident
                pl.BlockSpec((1, dim), lambda i: (0, 0)),         # b2 resident
            ],
            out_specs=pl.BlockSpec((tm, dim), lambda i: (i, 0)),
        )
        semantics = ("parallel",)
    else:
        kernel = functools.partial(_ffn_kernel_stream,
                                   approximate_gelu=approximate_gelu)
        grid_spec = pltpu.PrefetchScalarGridSpec(
            num_scalar_prefetch=0,
            grid=(n_row_tiles, n_k_tiles),
            in_specs=[
                pl.BlockSpec((tm, dim), lambda i, k: (i, 0)),   # x row tile
                pl.BlockSpec((dim, tk), lambda i, k: (0, k)),   # w1 k-chunk
                pl.BlockSpec((1, tk), lambda i, k: (0, k)),     # b1 k-chunk
                pl.BlockSpec((tk, dim), lambda i, k: (k, 0)),   # w2 k-chunk
                pl.BlockSpec((1, dim), lambda i, k: (0, 0)),    # b2
            ],
            out_specs=pl.BlockSpec((tm, dim), lambda i, k: (i, 0)),
            scratch_shapes=[pltpu.VMEM((tm, dim), jnp.float32)],
        )
        semantics = ("parallel", "arbitrary")

    out = pl.pallas_call(
        kernel,
        out_shape=jax.ShapeDtypeStruct((padded_rows, dim), x.dtype),
        grid_spec=grid_spec,
        compiler_params=pltpu.CompilerParams(
            dimension_semantics=semantics,
            vmem_limit_bytes=vmem_limit,
        ),
        cost_estimate=cost,
    )(x2d, w1, b1_2d, w2, b2_2d)

    if padded_rows != rows:
        out = out[:rows]
    return out.reshape(orig_shape)


def _init_params(key, dim, hidden_dim, dtype=jnp.float32):
    """Deterministic init mimicking torch.nn.Linear default
    (U[-1/sqrt(fan_in), 1/sqrt(fan_in)])."""
    k1, k2, k3, k4 = jax.random.split(key, 4)
    bound1 = 1.0 / math.sqrt(dim)
    bound2 = 1.0 / math.sqrt(hidden_dim)
    # Stored as (in_features, out_features) so the kernel does x @ W directly.
    w1 = jax.random.uniform(k1, (dim, hidden_dim), dtype, -bound1, bound1)
    b1 = jax.random.uniform(k2, (hidden_dim,), dtype, -bound1, bound1)
    w2 = jax.random.uniform(k3, (hidden_dim, dim), dtype, -bound2, bound2)
    b2 = jax.random.uniform(k4, (dim,), dtype, -bound2, bound2)
    return w1, b1, w2, b2


def _reference(x, w1, b1, w2, b2):
    h = x @ w1 + b1
    h = 0.5 * h * (1.0 + jax.lax.erf(h / math.sqrt(2.0)))
    return h @ w2 + b2


if __name__ == "__main__":
    key = jax.random.PRNGKey(0)
    kx, kp, kx2, kp2 = jax.random.split(key, 4)

    # Test 1: small shapes (resident-weight path; hidden padded 64 -> 128).
    batch, seq, dim, hidden_dim = 2, 8, 32, 64
    x = jax.random.normal(kx, (batch, seq, dim), jnp.float32)
    w1, b1, w2, b2 = _init_params(kp, dim, hidden_dim)
    y = jax.block_until_ready(feedforward_pallas(x, w1, b1, w2, b2))
    y_ref = _reference(x, w1, b1, w2, b2)
    assert y.shape == x.shape
    assert jnp.allclose(y, y_ref, atol=1e-5, rtol=1e-5), "mismatch (resident)"

    # Test 2: force the streamed-hidden accumulator path (hidden_tile < hidden).
    dim2, hidden_dim2 = 64, 256
    x2 = jax.random.normal(kx2, (batch, seq, dim2), jnp.float32)
    w1b, b1b, w2b, b2b = _init_params(kp2, dim2, hidden_dim2)
    y2 = jax.block_until_ready(
        feedforward_pallas(x2, w1b, b1b, w2b, b2b, hidden_tile=128))
    y2_ref = _reference(x2, w1b, b1b, w2b, b2b)
    assert y2.shape == x2.shape
    assert jnp.allclose(y2, y2_ref, atol=1e-5, rtol=1e-5), "mismatch (stream)"

    print("KERNEL_OK")
</pallas_src>

<mosaic_0001>
module attributes {stable_mosaic.version = 11 : i64} {
  func.func @_ffn_kernel_resident(%arg0: i32, %arg1: memref<16x32xf32, #tpu.memory_space<vmem>>, %arg2: memref<32x128xf32, #tpu.memory_space<vmem>>, %arg3: memref<1x128xf32, #tpu.memory_space<vmem>>, %arg4: memref<128x32xf32, #tpu.memory_space<vmem>>, %arg5: memref<1x32xf32, #tpu.memory_space<vmem>>, %arg6: memref<16x32xf32, #tpu.memory_space<vmem>>) attributes {dimension_semantics = [#tpu.dimension_semantics<parallel>], iteration_bounds = array<i64: 1>, scalar_prefetch = 0 : i64, scratch_operands = 0 : i64, tpu.core_type = #tpu.core_type<tc>, window_params = [{transform_indices = @transform_0, window_bounds = array<i64: 16, 32>}, {pipeline_mode = #tpu.pipeline_mode<synchronous>, transform_indices = @transform_1, window_bounds = array<i64: 32, 128>}, {pipeline_mode = #tpu.pipeline_mode<synchronous>, transform_indices = @transform_2, window_bounds = array<i64: 1, 128>}, {pipeline_mode = #tpu.pipeline_mode<synchronous>, transform_indices = @transform_3, window_bounds = array<i64: 128, 32>}, {pipeline_mode = #tpu.pipeline_mode<synchronous>, transform_indices = @transform_4, window_bounds = array<i64: 1, 32>}, {transform_indices = @transform_5, window_bounds = array<i64: 16, 32>}]} {
    %c0 = arith.constant 0 : index
    %c0_0 = arith.constant 0 : index
    %0 = vector.load %arg1[%c0, %c0_0] : memref<16x32xf32, #tpu.memory_space<vmem>>, vector<16x32xf32>
    %c0_1 = arith.constant 0 : index
    %c0_2 = arith.constant 0 : index
    %1 = vector.load %arg2[%c0_1, %c0_2] : memref<32x128xf32, #tpu.memory_space<vmem>>, vector<32x128xf32>
    %cst = arith.constant dense<0.000000e+00> : vector<16x128xf32>
    %2 = tpu.matmul %0, %1, %cst {dimension_numbers = #tpu.dot_dimension_numbers<[1], [0], [0], [1], [0, 0, 1, 1], [], []>} : vector<16x32xf32>, vector<32x128xf32>, vector<16x128xf32> -> vector<16x128xf32>
    %c0_3 = arith.constant 0 : index
    %c0_4 = arith.constant 0 : index
    %3 = vector.load %arg3[%c0_3, %c0_4] : memref<1x128xf32, #tpu.memory_space<vmem>>, vector<1x128xf32>
    %4 = vector.broadcast %3 : vector<1x128xf32> to vector<16x128xf32>
    %5 = arith.addf %2, %4 : vector<16x128xf32>
    %cst_5 = arith.constant 5.000000e-01 : f32
    %6 = vector.broadcast %cst_5 : f32 to vector<16x128xf32>
    %7 = arith.mulf %6, %5 : vector<16x128xf32>
    %cst_6 = arith.constant 0.707106769 : f32
    %8 = vector.broadcast %cst_6 : f32 to vector<16x128xf32>
    %9 = arith.mulf %5, %8 : vector<16x128xf32>
    %10 = math.erf %9 : vector<16x128xf32>
    %cst_7 = arith.constant 1.000000e+00 : f32
    %11 = vector.broadcast %cst_7 : f32 to vector<16x128xf32>
    %12 = arith.addf %11, %10 : vector<16x128xf32>
    %13 = arith.mulf %7, %12 : vector<16x128xf32>
    %c0_8 = arith.constant 0 : index
    %c0_9 = arith.constant 0 : index
    %14 = vector.load %arg4[%c0_8, %c0_9] : memref<128x32xf32, #tpu.memory_space<vmem>>, vector<128x32xf32>
    %cst_10 = arith.constant dense<0.000000e+00> : vector<16x32xf32>
    %15 = tpu.matmul %13, %14, %cst_10 {dimension_numbers = #tpu.dot_dimension_numbers<[1], [0], [0], [1], [0, 0, 1, 1], [], []>} : vector<16x128xf32>, vector<128x32xf32>, vector<16x32xf32> -> vector<16x32xf32>
    %c0_11 = arith.constant 0 : index
    %c0_12 = arith.constant 0 : index
    %16 = vector.load %arg5[%c0_11, %c0_12] : memref<1x32xf32, #tpu.memory_space<vmem>>, vector<1x32xf32>
    %17 = vector.broadcast %16 : vector<1x32xf32> to vector<16x32xf32>
    %18 = arith.addf %15, %17 : vector<16x32xf32>
    %c0_13 = arith.constant 0 : index
    %c0_14 = arith.constant 0 : index
    %19 = vector.load %arg6[%c0_13, %c0_14] : memref<16x32xf32, #tpu.memory_space<vmem>>, vector<16x32xf32>
    tpu.vector_store %arg6[%c0_13, %c0_14], %18 {strides = array<i32>} : memref<16x32xf32, #tpu.memory_space<vmem>>, vector<16x32xf32>,
    return
  }
  func.func @transform_0(%arg0: i32) -> (i32, i32) {
    %c0_i32 = arith.constant 0 : i32
    %c0_i32_0 = arith.constant 0 : i32
    return %arg0, %c0_i32 : i32, i32
  }
  func.func @transform_1(%arg0: i32) -> (i32, i32) {
    %c0_i32 = arith.constant 0 : i32
    %c0_i32_0 = arith.constant 0 : i32
    %c0_i32_1 = arith.constant 0 : i32
    return %c0_i32, %c0_i32_0 : i32, i32
  }
  func.func @transform_2(%arg0: i32) -> (i32, i32) {
    %c0_i32 = arith.constant 0 : i32
    %c0_i32_0 = arith.constant 0 : i32
    %c0_i32_1 = arith.constant 0 : i32
    return %c0_i32, %c0_i32_0 : i32, i32
  }
  func.func @transform_3(%arg0: i32) -> (i32, i32) {
    %c0_i32 = arith.constant 0 : i32
    %c0_i32_0 = arith.constant 0 : i32
    %c0_i32_1 = arith.constant 0 : i32
    return %c0_i32, %c0_i32_0 : i32, i32
  }
  func.func @transform_4(%arg0: i32) -> (i32, i32) {
    %c0_i32 = arith.constant 0 : i32
    %c0_i32_0 = arith.constant 0 : i32
    %c0_i32_1 = arith.constant 0 : i32
    return %c0_i32, %c0_i32_0 : i32, i32
  }
  func.func @transform_5(%arg0: i32) -> (i32, i32) {
    %c0_i32 = arith.constant 0 : i32
    %c0_i32_0 = arith.constant 0 : i32
    return %arg0, %c0_i32 : i32, i32
  }
}

</mosaic_0001>

<bundles_post_ra>
// kernel: tpu_custom_call.1
= control target key start
LH: loop header
LB: loop body
LE: loop exit
PB: predicated region body
PF: predicated region fallthrough
CT: control target
= control target key end

     0   :  { %vm34_vm0 = vcmask 261120   ;;  %s508_s0 = inlined_call_operand.vmem [shape: f32[16,32], index: 0, kind: input, shape index: {}]   ;;  %s509_s1 = inlined_call_operand.vmem [shape: f32[32,128], index: 1, kind: input, shape index: {}]   ;;  %s510_s2 = inlined_call_operand.vmem [shape: f32[1,128], index: 2, kind: input, shape index: {}]   ;;  %s511_s3 = inlined_call_operand.vmem [shape: f32[128,32], index: 3, kind: input, shape index: {}]   ;;  %s512_s4 = inlined_call_operand.vmem [shape: f32[1,32], index: 4, kind: input, shape index: {}]   ;;  %s513_s5 = inlined_call_operand.hbm [shape: f32[16,32], index: 5, kind: output, shape index: {}]  }
   0x1   :  { %v23_v0 = vld [vmem:[%s509_s1] sm:$0xff]  ;;  %v24_v1 = vld [vmem:[%s509_s1 + $0x8] sm:$0xff]  ;;  %v25_v2 = vld [vmem:[%s509_s1 + $0x10] sm:$0xff] }
   0x2   :  { %v316_v3 = vpack.c.bf16 %v24_v1, %v23_v0  ;;  %v26_v4 = vld [vmem:[%s509_s1 + $0x18] sm:$0xff]  ;;  %v21_v5 = vld [vmem:[%s508_s0] sm:$0xff]  ;;  %v127_v8 = vld [vmem:[%s511_s3 + $0x8] sm:$0xff] }
   0x3   :  { %v320_v6 = vpack.c.bf16 %v26_v4, %v25_v2  ;;  %278 = vmatprep.mubr.msk.f32.mxu0 %vm34_vm0, %v21_v5  ;;  %v126_v7 = vld [vmem:[%s511_s3] sm:$0xff]  ;;  %v128_v9 = vld [vmem:[%s511_s3 + $0x10] sm:$0xff]  ;;  %v129_v11 = vld [vmem:[%s511_s3 + $0x18] sm:$0xff] }
   0x4   :  { %317 = vmatprep.subr.bf16.mxu0 %v316_v3  ;;  %v324_v10 = vpack.c.bf16 %v127_v8, %v126_v7  ;;  %v328_v12 = vpack.c.bf16 %v129_v11, %v128_v9  ;;  %v130_v13 = vld [vmem:[%s511_s3 + $0x20] sm:$0xff]  ;;  %v131_v14 = vld [vmem:[%s511_s3 + $0x28] sm:$0xff] }
   0x5   :  { %319 = vmatpush3.bf16.msra.mxu0 %v316_v3 }
   0x6   :  { %10 = vsyncpa [#allocation3], 0  ;;  %321 = vmatprep.subr.bf16.mxu0 %v320_v6  ;;  %325 = vmatprep.subr.bf16.mxu1 %v324_v10  ;;  %v332_v15 = vpack.c.bf16 %v131_v14, %v130_v13  ;;  %v22_v16 = vld [vmem:[%s508_s0 + $0x8] sm:$0xff]  ;;  %v132_v17 = vld [vmem:[%s511_s3 + $0x30] sm:$0xff]  ;;  %s387_s11 = smov [#allocation2]  }
   0x7   :  { %327 = vmatpush3.bf16.msra.mxu1 %v324_v10  ;;  %v133_v18 = vld [vmem:[%s511_s3 + $0x38] sm:$0xff]  ;;  %v134_v20 = vld [vmem:[%s511_s3 + $0x40] sm:$0xff]  ;;  %v135_v21 = vld [vmem:[%s511_s3 + $0x48] sm:$0xff]  ;;  %s231_s12 = sshll.u32 %s387_s11, 4  ;;  %s232_s12 = int_to_ptr.vmem [resolvable:$true] %s231_s12 }
   0x8   :  { %329 = vmatprep.subr.bf16.mxu1 %v328_v12  ;;  %v336_v19 = vpack.c.bf16 %v133_v18, %v132_v17  ;;  %v340_v22 = vpack.c.bf16 %v135_v21, %v134_v20  ;;  %v136_v23 = vld [vmem:[%s511_s3 + $0x50] sm:$0xff]  ;;  %v137_v24 = vld [vmem:[%s511_s3 + $0x58] sm:$0xff]  ;;  %v138_v26 = vld [vmem:[%s511_s3 + $0x60] sm:$0xff]  ;;  %s363_s13 = scalar_lea.vmem %s232_s12, 256  ;;  %p368_p1 = scmp.lt.s32.totalorder %s232_s12, %s232_s12 }
   0x9   :  { %323 = vmatpush3.bf16.msra.mxu0 %v320_v6  ;;  %v344_v25 = vpack.c.bf16 %v137_v24, %v136_v23  ;;  %v139_v27 = vld [vmem:[%s511_s3 + $0x68] sm:$0xff]  ;;  %v140_v29 = vld [vmem:[%s511_s3 + $0x70] sm:$0xff]  ;;  %v141_v30 = vld [vmem:[%s511_s3 + $0x78] sm:$0xff]  ;;  %p364_p0 = scmp.ne.s32.totalorder %s232_s12, %s363_s13  ;;  %p369_p2 = scmp.lt.s32.totalorder %s363_s13, %s363_s13 }
   0xa   :  { %v348_v28 = vpack.c.bf16 %v139_v27, %v138_v26  ;;  %v352_v31 = vpack.c.bf16 %v141_v30, %v140_v29  ;;  %v242_v32 = vld [vmem:[%s510_s2] ss:$0 sm:$0xff] }
   0xb   :  { %331 = vmatpush3.bf16.msra.mxu1 %v328_v12  ;;  %v245_v47 = vld [vmem:[%s512_s4] ss:$0 sm:$0xff]  ;;  %p370_p3 = por %p369_p2, %p368_p1 }
   0xc   :  { %279 = vmatmul.mubr.msk.f32.vlgmr.msra.gmra.mrb[0].mxu0 %vm34_vm0, %v22_v16  ;;  %333 = vmatprep.subr.bf16.mxu1 %v332_v15 }
   0xd   :  { %p371_p4 = pnand %p370_p3, %p364_p0 }
   0xf   :  { %335 = vmatpush3.bf16.msra.mxu1 %v332_v15 }
  0x10   :  { %337 = vmatprep.subr.bf16.mxu1 %v336_v19 }
  0x13   :  { %339 = vmatpush3.bf16.msra.mxu1 %v336_v19 }
  0x14   :  { %341 = vmatprep.subr.bf16.mxu1 %v340_v22 }
  0x17   :  { %343 = vmatpush3.bf16.msra.mxu1 %v340_v22 }
  0x18   :  { %345 = vmatprep.subr.bf16.mxu1 %v344_v25 }
  0x1b   :  { %347 = vmatpush3.bf16.msra.mxu1 %v344_v25 }
  0x1c   :  { %349 = vmatprep.subr.bf16.mxu1 %v348_v28 }
  0x1f   :  { %351 = vmatpush3.bf16.msra.mxu1 %v348_v28 }
  0x20   :  { %353 = vmatprep.subr.bf16.mxu1 %v352_v31 }
  0x23   :  { %355 = vmatpush3.bf16.msra.mxu1 %v352_v31 }
  0xdf   :  { %v280_v33 = vpop.f32.mrb[0].mxu0 }
  0xe0   :  { %v113_v34 = vadd.f32 %v280_v33, %v242_v32  ;;  %v107_v35 = vpop.f32.mrb[1].mxu0 }
  0xe1   :  { %v108_v36 = vadd.f32 %v242_v32, %v107_v35 }
  0xe2   :  { %v119_v37 = vmul.f32 0.70710677, %v113_v34  ;;  %v117_v44 = vmul.f32 0.5, %v113_v34 }
  0xe3   :  { %v118_v38 = vmul.f32 0.70710677, %v108_v36  ;;  %v116_v42 = vmul.f32 0.5, %v108_v36 }
  0xe4   :  { %359 = verf.f32 %v119_v37 }
  0xe5   :  { %361 = verf.f32 %v118_v38 }
  0xee   :  { %v360_v39 = vpop.eup %359 }
  0xef   :  { %v362_v40 = vpop.eup %361  ;;  %v123_v41 = vadd.f32 1.0, %v360_v39 }
  0xf0   :  { %v122_v43 = vadd.f32 1.0, %v362_v40 }
  0xf1   :  { %v125_v46 = vmul.f32 %v123_v41, %v117_v44 }
  0xf2   :  { %v124_v45 = vmul.f32 %v122_v43, %v116_v42 }
  0xf4   :  { %313 = vmatprep.mubr.f32.mxu1 %v124_v45 }
  0xf5   :  { %314 = vmatmul.mubr.f32.vlgmr.msra.gmra.mrb[0].mxu1 %v125_v46 }
 0x1c8   :  { %v315_v48 = vpop.f32.mrb[0].mxu1 }
 0x1c9   :  { %v221_v49 = vadd.f32 %v315_v48, %v245_v47  ;;  %v215_v50 = vpop.f32.mrb[1].mxu1 }
 0x1ca   :  { %v216_v51 = vadd.f32 %v245_v47, %v215_v50 }
 0x1cb   :  { %225 = vst.msk [vmem:[#allocation2 + $0x8] sm:$0xff] %vm34_vm0, %v221_v49 }
 0x1cc   :  { %224 = vst.msk [vmem:[#allocation2] sm:$0xff] %vm34_vm0, %v216_v51 }
 0x1cd   :  { %374 = shalt.err (!%p371_p4)
}
 0x1ce   :  { %s375_s15 = scalar_lea.hbm %s513_s5, 256 }
 0x1cf   :  { %p376_p5 = scmp.ne.s32.totalorder %s513_s5, %s375_s15  ;;  %p379_p6 = scmp.lt.u32.totalorder %s375_s15, %s513_s5 }
 0x1d1   :  { %p381_p7 = pnand %p379_p6, %p376_p5 }
 0x1d3   :  { %384 = shalt.err (!%p381_p7)
}
 0x1d4   :  { %s388_s20 = smov 128   ;;  %s389_s21 = smov 8  }
 0x1d5   :  { %237 = dma.vmem_to_hbm [thread:$0]  %s232_s12, 256, %s513_s5, [#allocation3], %s388_s20, %s388_s20, %s389_s21  }
 0x1d6   :  { %385 = dma.done.wait [#allocation3], 256  }
 0x1d7   :  { %386 = vsyncadd [#allocation3], 4294967040 }
 0x1d8   :  { %241 = vsyncpa [#allocation3], 1 }

</bundles_post_ra>
